<compile_context>
chip_gen: v7x
topology: tpu7x:2x2x1
jax: 0.10.0
libtpu: 0.0.40
codegen_flags: <defaults>
</compile_context>

<pallas_src>
import numpy as np
import jax
import jax.numpy as jnp
from jax.experimental import pallas as pl
from jax.experimental.pallas import tpu as pltpu


# ----------------------------- Pallas kernel ------------------------------ #
def _transition_kernel(x_ref, scale_ref, shift_ref, p_ref, w_ref, o_ref):
    # x_ref:     (BN, BC, H*W)         input tile, native dtype, lane-dense
    # scale_ref: (BC, 1)   f32         folded BN scale (per channel)
    # shift_ref: (BC, 1)   f32         folded BN shift (per channel)
    # p_ref:     (H*W, HWo_pad) bf16   fused zero-pad + 2x2 avg-pool operator
    # w_ref:     (CO_pad, BC)   bf16   1x1-conv weight tile
    # o_ref:     (BN, CO_pad, HWo_pad) f32  resident accumulator over k
    k = pl.program_id(1)

    @pl.when(k == 0)
    def _init():
        o_ref[...] = jnp.zeros_like(o_ref)

    bn = x_ref.shape[0]

    # Folded BatchNorm (inference) + ReLU in f32; scale/shift broadcast along
    # lanes (H*W) and the image axis for free.
    y = jnp.maximum(
        x_ref[...].astype(jnp.float32) * scale_ref[...][None]
        + shift_ref[...][None], 0.0)                          # (BN, BC, H*W)

    p = p_ref[...]
    w = w_ref[...]
    for i in range(bn):                                       # static unroll, BN <= 4
        # Fused zero-pad + 2x2 avg pool: one MXU matmul, contraction = H*W.
        pooled = jnp.dot(y[i].astype(jnp.bfloat16), p,
                         preferred_element_type=jnp.float32)  # (BC, HWo_pad)
        # 1x1 conv = channel contraction over this C_in tile; accumulate over k.
        o_ref[i] += jnp.dot(w, pooled.astype(jnp.bfloat16),
                            preferred_element_type=jnp.float32)  # (CO_pad, HWo_pad)


# ------------------------------- helpers ----------------------------------- #
def _round_up(v, m):
    return -(-v // m) * m


def _pool_conv_spatial_matrix(extent, stride, padding):
    """1-D linear operator (Eo, extent): 1x1-conv spatial selection (stride /
    zero pad) followed by avg_pool(kernel=2, stride=2, pad=0) along one axis.
    Entries are in {0, 0.5}."""
    ec = (extent + 2 * padding - 1) // stride + 1      # conv output extent
    S = np.zeros((ec, extent), np.float32)             # zero-pad / stride select
    for i in range(ec):
        r = i * stride - padding
        if 0 <= r < extent:
            S[i, r] = 1.0
    eo = ec // 2                                       # pooled extent
    A = np.zeros((eo, ec), np.float32)                 # 2x2 avg pool, 1-D factor
    for o in range(eo):
        A[o, 2 * o] = 0.5
        A[o, 2 * o + 1] = 0.5
    return A @ S                                       # (eo, extent)


def _footprint_bytes(bn, bc, hw, hwo_pad, co_pad, x_itemsize, n_xbuf):
    """Approximate per-step VMEM footprint (multi-buffered inputs, resident out)."""
    xb = bn * bc * hw * x_itemsize
    wb = co_pad * bc * 2
    sb = 2 * bc * 128 * 4                 # scale + shift, lane-padded to 128
    pb = _round_up(hw, 8) * hwo_pad * 2
    ob = bn * co_pad * hwo_pad * 4
    return n_xbuf * xb + 2 * (wb + sb + pb) + ob


# -------------------------------- wrapper ----------------------------------- #
def transition_block_2d(x, gamma, beta, running_mean, running_var, conv_w,
                        *, eps=2e-5, stride=1, padding=1,
                        block_cin=None, block_n=None):
    """x: (N, C_in, H, W); conv_w: (C_out, C_in, 1, 1).  Returns (N, C_out, Ho, Wo)."""
    N, C_in, H, W = x.shape
    C_out = conv_w.shape[0]
    HW = H * W

    # Fold BN (inference mode) into per-channel scale / shift.
    # TODO(synk): training-mode batch statistics (and running-stat updates) are
    # not supported; inference-style folding of running stats is used.
    scale = (gamma.astype(jnp.float32) /
             jnp.sqrt(running_var.astype(jnp.float32) + eps))
    shift = beta.astype(jnp.float32) - running_mean.astype(jnp.float32) * scale
    scale = scale[:, None]                                    # (C_in, 1)
    shift = shift[:, None]

    # Fused zero-pad + 2x2 average-pool operator P = kron(Mr, Mc)^T, padded on
    # the output axis to a multiple of 128 lanes (pad columns are zero, so the
    # padded output region is exactly zero and is sliced off below).
    # Entries of P are in {0, 0.25} -> exact in bf16.
    Mr = _pool_conv_spatial_matrix(H, stride, padding)        # (Ho, H)
    Mc = _pool_conv_spatial_matrix(W, stride, padding)        # (Wo, W)
    Ho, Wo = Mr.shape[0], Mc.shape[0]
    HWo = Ho * Wo
    HWo_pad = _round_up(HWo, 128)
    P = np.kron(Mr, Mc).T                                     # (H*W, Ho*Wo)
    P = np.pad(P, ((0, 0), (0, HWo_pad - HWo)))
    p_op = jnp.asarray(P, dtype=jnp.bfloat16)

    # 1x1 conv weight: (C_out, C_in), C_out zero-padded to a sublane multiple.
    CO_pad = _round_up(C_out, 8)
    w2 = conv_w[:, :, 0, 0].astype(jnp.bfloat16)              # (C_out, C_in)
    w2 = jnp.pad(w2, ((0, CO_pad - C_out), (0, 0)))           # (CO_pad, C_in)

    # Lane-dense input layout; keep the caller's dtype (stream bf16 as bf16).
    x2 = x.reshape(N, C_in, HW)
    x_itemsize = np.dtype(x.dtype).itemsize

    # --- block sizing (v7x: 64 MiB VMEM / TC -> keep footprint well under) --- #
    VMEM_BUDGET = 40 * 1024 * 1024

    def fits(bn, bc):
        return _footprint_bytes(bn, bc, HW, HWo_pad, CO_pad,
                                x_itemsize, 3) <= VMEM_BUDGET

    if block_cin is None:
        # Full C_in removes the reduction axis; otherwise the largest multiple
        # of 128 dividing C_in that fits (128 suffices on v5e, 256+ on v6e/v7x).
        candidates = [C_in] + [m for m in (512, 256, 128)
                               if m < C_in and C_in % m == 0]
        block_cin = candidates[-1]
        for c in candidates:
            if fits(1, c):
                block_cin = c
                break
    assert C_in % block_cin == 0
    assert block_cin == C_in or block_cin % 128 == 0, (
        "block_cin must be C_in or a multiple of 128")

    if block_n is None:
        # Pack a few images per step to amortize per-step overhead, but keep
        # >= 2 N-blocks so megacore / 2-TC chips still have a parallel axis.
        block_n = 1
        for bn in (4, 2):
            if N % bn == 0 and N // bn >= 2 and fits(bn, block_cin):
                block_n = bn
                break
    assert N % block_n == 0

    K = C_in // block_cin
    NB = N // block_n
    total_steps = NB * K

    n_xbuf = 3 if total_steps >= 3 else 2
    footprint = _footprint_bytes(block_n, block_cin, HW, HWo_pad, CO_pad,
                                 x_itemsize, n_xbuf)
    vmem_limit = int(min(max(32 * 1024 * 1024, 2 * footprint),
                         48 * 1024 * 1024))

    # Deepen the input pipeline once there are enough steps to hide HBM latency.
    x_spec_kwargs = {}
    if total_steps >= 3:
        x_spec_kwargs["pipeline_mode"] = pl.Buffered(3)
    x_spec = pl.BlockSpec((block_n, block_cin, HW), lambda nb, k: (nb, k, 0),
                          **x_spec_kwargs)

    flops = N * C_in * (3 * HW                    # BN affine + ReLU
                        + 2 * HW * HWo_pad        # fused pad + pool matmul
                        + 2 * CO_pad * HWo_pad)   # 1x1 conv matmul
    bytes_accessed = (int(x2.size) * x_itemsize
                      + 2 * 4 * C_in
                      + total_steps * CO_pad * block_cin * 2
                      + _round_up(HW, 8) * HWo_pad * 2
                      + 4 * N * CO_pad * HWo_pad)
    cost = pl.CostEstimate(flops=int(flops), transcendentals=0,
                           bytes_accessed=int(bytes_accessed))

    out_flat = pl.pallas_call(
        _transition_kernel,
        out_shape=jax.ShapeDtypeStruct((N, CO_pad, HWo_pad), jnp.float32),
        grid=(NB, K),
        in_specs=[
            x_spec,
            pl.BlockSpec((block_cin, 1), lambda nb, k: (k, 0)),
            pl.BlockSpec((block_cin, 1), lambda nb, k: (k, 0)),
            pl.BlockSpec((HW, HWo_pad), lambda nb, k: (0, 0)),
            pl.BlockSpec((CO_pad, block_cin), lambda nb, k: (0, k)),
        ],
        out_specs=pl.BlockSpec((block_n, CO_pad, HWo_pad),
                               lambda nb, k: (nb, 0, 0)),
        compiler_params=pltpu.CompilerParams(
            dimension_semantics=("parallel", "arbitrary"),
            vmem_limit_bytes=vmem_limit),
        cost_estimate=cost,
    )(x2, scale, shift, p_op, w2)

    # Channel-major output: drop padding and reshape -> already NCHW (no transpose).
    return out_flat[:, :C_out, :HWo].reshape(N, C_out, Ho, Wo)


# --------------------------- pure-JAX reference ---------------------------- #
def _reference(x, gamma, beta, mean, var, conv_w, *, eps=2e-5, stride=1, padding=1):
    xn = (x - mean[None, :, None, None]) / jnp.sqrt(var[None, :, None, None] + eps)
    y = jnp.maximum(xn * gamma[None, :, None, None] + beta[None, :, None, None], 0.0)
    h = jax.lax.conv_general_dilated(
        y, conv_w, (stride, stride), [(padding, padding)] * 2,
        dimension_numbers=("NCHW", "OIHW", "NCHW"))
    N, C, Hc, Wc = h.shape
    Ho, Wo = Hc // 2, Wc // 2
    h = h[:, :, :Ho * 2, :Wo * 2].reshape(N, C, Ho, 2, Wo, 2).mean(axis=(3, 5))
    return h


# ---------------------------------- main ----------------------------------- #
if __name__ == "__main__":
    def run_case(N, C_in, C_out, H, W, seed=0, **kwargs):
        key = jax.random.PRNGKey(seed)
        kx, kg, kb, km, kv, kw = jax.random.split(key, 6)
        x = jax.random.normal(kx, (N, C_in, H, W), dtype=jnp.float32)
        gamma = jax.random.uniform(kg, (C_in,), jnp.float32, 0.5, 1.5)
        beta = 0.1 * jax.random.normal(kb, (C_in,), jnp.float32)
        running_mean = 0.1 * jax.random.normal(km, (C_in,), jnp.float32)
        running_var = jax.random.uniform(kv, (C_in,), jnp.float32, 0.5, 1.5)
        conv_w = (jax.random.normal(kw, (C_out, C_in, 1, 1), jnp.float32)
                  / np.sqrt(C_in))
        out = transition_block_2d(x, gamma, beta, running_mean, running_var,
                                  conv_w, **kwargs)
        out = jax.block_until_ready(out)
        ref = _reference(x, gamma, beta, running_mean, running_var, conv_w)
        assert out.shape == ref.shape, (out.shape, ref.shape)
        # bf16 MXU operands with f32 accumulation -> bf16-level tolerance.
        np.testing.assert_allclose(np.asarray(out), np.asarray(ref),
                                   rtol=2e-2, atol=2e-2)

    # 1) Default path: full-C_in block (no reduction axis), block_n = 1.
    run_case(2, 16, 8, 16, 16, seed=0)
    # 2) C_in reduction tiling (K=2) + Buffered(3) input pipeline (4 grid steps).
    run_case(2, 256, 32, 16, 16, seed=1, block_cin=128)
    # 3) Batched image block (block_n auto-selects 2).
    run_case(4, 16, 8, 16, 16, seed=2)

    print("KERNEL_OK")
</pallas_src>

<mosaic_0001>
module attributes {stable_mosaic.version = 11 : i64} {
  func.func @_transition_kernel(%arg0: i32, %arg1: i32, %arg2: memref<1x16x256xf32, #tpu.memory_space<vmem>>, %arg3: memref<16x1xf32, #tpu.memory_space<vmem>>, %arg4: memref<16x1xf32, #tpu.memory_space<vmem>>, %arg5: memref<256x128xbf16, #tpu.memory_space<vmem>>, %arg6: memref<8x16xbf16, #tpu.memory_space<vmem>>, %arg7: memref<1x8x128xf32, #tpu.memory_space<vmem>>) attributes {dimension_semantics = [#tpu.dimension_semantics<parallel>, #tpu.dimension_semantics<arbitrary>], iteration_bounds = array<i64: 2, 1>, scalar_prefetch = 0 : i64, scratch_operands = 0 : i64, tpu.core_type = #tpu.core_type<tc>, window_params = [{transform_indices = @transform_0, window_bounds = array<i64: 1, 16, 256>}, {transform_indices = @transform_1, window_bounds = array<i64: 16, 1>}, {transform_indices = @transform_2, window_bounds = array<i64: 16, 1>}, {pipeline_mode = #tpu.pipeline_mode<synchronous>, transform_indices = @transform_3, window_bounds = array<i64: 256, 128>}, {transform_indices = @transform_4, window_bounds = array<i64: 8, 16>}, {transform_indices = @transform_5, window_bounds = array<i64: 1, 8, 128>}]} {
    %c0_i32 = arith.constant 0 : i32
    %0 = arith.cmpi eq, %arg1, %c0_i32 : i32
    %1 = arith.extui %0 : i1 to i32
    %c0_i32_0 = arith.constant 0 : i32
    %2 = arith.cmpi ne, %1, %c0_i32_0 : i32
    scf.if %2 {
      %cst_19 = arith.constant 0.000000e+00 : f32
      %27 = vector.broadcast %cst_19 : f32 to vector<1x8x128xf32>
      %c0_20 = arith.constant 0 : index
      %c0_21 = arith.constant 0 : index
      %c0_22 = arith.constant 0 : index
      %28 = vector.load %arg7[%c0_20, %c0_21, %c0_22] : memref<1x8x128xf32, #tpu.memory_space<vmem>>, vector<1x8x128xf32>
      tpu.vector_store %arg7[%c0_20, %c0_21, %c0_22], %27 {strides = array<i32>} : memref<1x8x128xf32, #tpu.memory_space<vmem>>, vector<1x8x128xf32>,
    } else {
    }
    %c0 = arith.constant 0 : index
    %c0_1 = arith.constant 0 : index
    %c0_2 = arith.constant 0 : index
    %3 = vector.load %arg2[%c0, %c0_1, %c0_2] : memref<1x16x256xf32, #tpu.memory_space<vmem>>, vector<1x16x256xf32>
    %c0_3 = arith.constant 0 : index
    %c0_4 = arith.constant 0 : index
    %4 = vector.load %arg3[%c0_3, %c0_4] : memref<16x1xf32, #tpu.memory_space<vmem>>, vector<16x1xf32>
    %5 = vector.shape_cast %4 : vector<16x1xf32> to vector<1x16x1xf32>
    %6 = vector.broadcast %5 : vector<1x16x1xf32> to vector<1x16x256xf32>
    %7 = arith.mulf %3, %6 : vector<1x16x256xf32>
    %c0_5 = arith.constant 0 : index
    %c0_6 = arith.constant 0 : index
    %8 = vector.load %arg4[%c0_5, %c0_6] : memref<16x1xf32, #tpu.memory_space<vmem>>, vector<16x1xf32>
    %9 = vector.shape_cast %8 : vector<16x1xf32> to vector<1x16x1xf32>
    %10 = vector.broadcast %9 : vector<1x16x1xf32> to vector<1x16x256xf32>
    %11 = arith.addf %7, %10 : vector<1x16x256xf32>
    %cst = arith.constant 0.000000e+00 : f32
    %12 = vector.broadcast %cst : f32 to vector<1x16x256xf32>
    %13 = arith.maximumf %11, %12 : vector<1x16x256xf32>
    %c0_7 = arith.constant 0 : index
    %c0_8 = arith.constant 0 : index
    %14 = vector.load %arg5[%c0_7, %c0_8] : memref<256x128xbf16, #tpu.memory_space<vmem>>, vector<256x128xbf16>
    %c0_9 = arith.constant 0 : index
    %c0_10 = arith.constant 0 : index
    %15 = vector.load %arg6[%c0_9, %c0_10] : memref<8x16xbf16, #tpu.memory_space<vmem>>, vector<8x16xbf16>
    %16 = vector.shape_cast %13 : vector<1x16x256xf32> to vector<16x256xf32>
    %17 = arith.truncf %16 : vector<16x256xf32> to vector<16x256xbf16>
    %cst_11 = arith.constant dense<0.000000e+00> : vector<16x128xf32>
    %18 = tpu.matmul %17, %14, %cst_11 {dimension_numbers = #tpu.dot_dimension_numbers<[1], [0], [0], [1], [0, 0, 1, 1], [], []>} : vector<16x256xbf16>, vector<256x128xbf16>, vector<16x128xf32> -> vector<16x128xf32>
    %c0_12 = arith.constant 0 : index
    %c0_13 = arith.constant 0 : index
    %c0_14 = arith.constant 0 : index
    %19 = vector.load %arg7[%c0_12, %c0_13, %c0_14] : memref<1x8x128xf32, #tpu.memory_space<vmem>>, vector<1x8x128xf32>
    %20 = vector.shape_cast %19 : vector<1x8x128xf32> to vector<8x128xf32>
    %21 = arith.truncf %18 : vector<16x128xf32> to vector<16x128xbf16>
    %cst_15 = arith.constant dense<0.000000e+00> : vector<8x128xf32>
    %22 = tpu.matmul %15, %21, %cst_15 {dimension_numbers = #tpu.dot_dimension_numbers<[1], [0], [0], [1], [0, 0, 1, 1], [], []>} : vector<8x16xbf16>, vector<16x128xbf16>, vector<8x128xf32> -> vector<8x128xf32>
    %23 = arith.addf %20, %22 : vector<8x128xf32>
    %c0_16 = arith.constant 0 : index
    %c0_17 = arith.constant 0 : index
    %c0_18 = arith.constant 0 : index
    %24 = vector.load %arg7[%c0_16, %c0_17, %c0_18] : memref<1x8x128xf32, #tpu.memory_space<vmem>>, vector<1x8x128xf32>
    %25 = vector.shape_cast %24 : vector<1x8x128xf32> to vector<8x128xf32>
    %26 = vector.shape_cast %23 : vector<8x128xf32> to vector<1x8x128xf32>
    tpu.vector_store %arg7[%c0_16, %c0_17, %c0_18], %26 {strides = array<i32>} : memref<1x8x128xf32, #tpu.memory_space<vmem>>, vector<1x8x128xf32>,
    return
  }
  func.func @transform_0(%arg0: i32, %arg1: i32) -> (i32, i32, i32) {
    %c0_i32 = arith.constant 0 : i32
    %c0_i32_0 = arith.constant 0 : i32
    return %arg0, %arg1, %c0_i32 : i32, i32, i32
  }
  func.func @transform_1(%arg0: i32, %arg1: i32) -> (i32, i32) {
    %c0_i32 = arith.constant 0 : i32
    %c0_i32_0 = arith.constant 0 : i32
    return %arg1, %c0_i32 : i32, i32
  }
  func.func @transform_2(%arg0: i32, %arg1: i32) -> (i32, i32) {
    %c0_i32 = arith.constant 0 : i32
    %c0_i32_0 = arith.constant 0 : i32
    return %arg1, %c0_i32 : i32, i32
  }
  func.func @transform_3(%arg0: i32, %arg1: i32) -> (i32, i32) {
    %c0_i32 = arith.constant 0 : i32
    %c0_i32_0 = arith.constant 0 : i32
    %c0_i32_1 = arith.constant 0 : i32
    return %c0_i32, %c0_i32_0 : i32, i32
  }
  func.func @transform_4(%arg0: i32, %arg1: i32) -> (i32, i32) {
    %c0_i32 = arith.constant 0 : i32
    %c0_i32_0 = arith.constant 0 : i32
    return %c0_i32, %arg1 : i32, i32
  }
  func.func @transform_5(%arg0: i32, %arg1: i32) -> (i32, i32, i32) {
    %c0_i32 = arith.constant 0 : i32
    %c0_i32_0 = arith.constant 0 : i32
    %c0_i32_1 = arith.constant 0 : i32
    return %arg0, %c0_i32, %c0_i32_0 : i32, i32, i32
  }
}

</mosaic_0001>

<bundles_post_ra>
// kernel: tpu_custom_call.1
= control target key start
LH: loop header
LB: loop body
LE: loop exit
PB: predicated region body
PF: predicated region fallthrough
CT: control target
= control target key end

     0   :  { %10 = vsyncpa [#allocation3], 0  ;;  %s1343_s0 = inlined_call_operand.hbm [shape: f32[2,16,256], index: 0, kind: input, shape index: {}]   ;;  %s1344_s1 = inlined_call_operand.vmem [shape: f32[16,1], index: 1, kind: input, shape index: {}]   ;;  %s1345_s2 = inlined_call_operand.vmem [shape: f32[16,1], index: 2, kind: input, shape index: {}]   ;;  %s1346_s3 = inlined_call_operand.hbm [shape: bf16[256,128], index: 3, kind: input, shape index: {}]   ;;  %s1347_s4 = inlined_call_operand.vmem [shape: bf16[8,16], index: 4, kind: input, shape index: {}]   ;;  %s1348_s5 = inlined_call_operand.hbm [shape: f32[2,8,128], index: 5, kind: output, shape index: {}]  }
   0x1   :  { %12 = vsyncpa [#allocation3 + $0x1], 0 }
   0x2   :  { %13 = vsyncpa [#allocation6], 0 }
   0x3   :  { %14 = vsyncpa [#allocation4], 0 }
   0x4   :  { %16 = vsyncpa [#allocation4 + $0x1], 0  ;;  %s1104_s18 = smov 0   ;;  %s1106_s19 = smov 0  }
   0x5   :  { %s1108_s20 = smov 0   ;;  %s1110_s21 = smov 0  }
   0x6   :  { %s1112_s22 = smov 0   ;;  %s1114_s23 = smov 0  }
   0x7 LB: > { %s753_s24 = sadd.s32 4294967295, %s1062_s23   ;;  %s754_s25 = sadd.s32 4294967294, %s1062_s23   ;;  %s1062_s23 = sphi %s1114_s23, %s22_s23   ;;  %s1058_s22 = sphi %s1112_s22, %s1372_s22   ;;  %s1054_s21 = sphi %s1110_s21, %s1371_s21   ;;  %s1050_s20 = sphi %s1108_s20, %s1370_s20   ;;  %s1046_s19 = sphi %s1106_s19, %s1369_s19   ;;  %s1042_s18 = sphi %s1104_s18, %s1368_s18  }
   0x8   : > { %p56_p0 = scmp.ne.s32.totalorder %s1046_s19, %s1042_s18  ;;  %p1138_p1 = scmp.eq.s32.totalorder %s753_s24, 0 }
   0x9   : > { %p1142_p2 = scmp.eq.s32.totalorder %s753_s24, 1  ;;  %p185_p3 = scmp.eq.s32.totalorder %s754_s25, 1 }
   0xa   : > { %s1353_s26 = scalar_select %p1138_p1, 1, 0 }
   0xb   : > { %s1354_s27 = scalar_select %p1142_p2, 1, 0 }
   0xc   : > { %p1148_p4 = por %p1138_p1, %p56_p0  ;;  %p755_p5 = scmp.ge.s32.totalorder %s1062_s23, 1 }
   0xd   : > { %p1153_p6 = por %p185_p3, %p56_p0  ;;  %p192_p7 = scmp.lt.s32.totalorder %s1062_s23, 3 }
   0xe   : > { %s1355_s28 = scalar_select %p1148_p4, 1, 0 }
   0xf   : > { %s1356_s29 = scalar_select %p1153_p6, 1, 0 }
  0x10   : > { %p1158_p8 = pnand %p755_p5, %p192_p7  ;;  %s1064_s6 = smov [#allocation5]  }
  0x11   : > { %s222_s7 = sshll.u32 %s1064_s6, 4  ;;  %s34_s9 = sadd.s32 1, %s1058_s22  ;;  %s223_s7 = int_to_ptr.vmem [resolvable:$true] %s222_s7 }
  0x12   : > { %s1357_s30 = scalar_select %p1158_p8, 1, 0 }
  0x13   : > { %p828_p9 = pneg %p1158_p8  ;;  %s918_s12 = scalar_lea.hbm %s1346_s3, 2048 }
  0x14   : > { %p919_p12 = scmp.ne.s32.totalorder %s1346_s3, %s918_s12  ;;  %p925_p5 = scmp.lt.u32.totalorder %s918_s12, %s1346_s3 }
  0x15   : > { %p1167_p11 = pnand %p828_p9, %p1138_p1 }
  0x17   : > { %p920_p13 = pneg %p1167_p11 }
  0x19   : > { %p921_p0 = pnand %p920_p13, %p919_p12 }
  0x1b   : > { %p922_p3 = pneg %p921_p0 }
  0x1d   : > { %p927_p7 = pnand %p925_p5, %p922_p3 }
  0x1f   : > { %930 = shalt.err (!%p927_p7)
}
  0x20   : > { %s931_s17 = scalar_lea.vmem %s223_s7, 2048  ;;  %p939_p1 = scmp.lt.s32.totalorder %s223_s7, %s223_s7 }
  0x21   : > { %p932_p9 = scmp.ne.s32.totalorder %s223_s7, %s931_s17  ;;  %p940_p4 = scmp.lt.s32.totalorder %s931_s17, %s931_s17 }
  0x23   : > { %p934_p10 = pnand %p932_p9, %p920_p13  ;;  %p941_p8 = por %p940_p4, %p939_p1 }
  0x25   : > { %p935_p6 = pneg %p934_p10 }
  0x27   : > { %p942_p2 = pnand %p941_p8, %p935_p6 }
  0x29   : > { %945 = shalt.err (!%p942_p2)
}
  0x2a   : > { %s1065_s24 = smov 64   ;;  %s1066_s25 = smov 4  }
  0x2b   : > { %831 = dma.hbm_to_vmem [thread:$0]  (!%p1167_p11), %s1346_s3, 2048, %s223_s7, [#allocation6], %s1065_s24, %s1065_s24, %s1066_s25  }
  0x2c   : > { %p36_p1 = scmp.ge.s32.totalorder %s34_s9, 2  ;;  %s43_s11 = sadd.s32 1, %s1050_s20 }
  0x2d   : > { %p50_p2 = scmp.ne.s32.totalorder %s1050_s20, %s1046_s19  ;;  %p51_p4 = scmp.eq.s32.totalorder %s1062_s23, 0 }
  0x2e   : > { %s1374_s9 = smov (%p36_p1, %s34_s9), 0  ;;  %p1360_p8 = scmp.ne.s32.totalorder %s1354_s27, 0 }
  0x2f   : > { %p1194_p6 = por %p51_p4, %p50_p2  ;;  %s38_s8 = ssub.s32 %s1058_s22, %s1374_s9 }
  0x30   : > { %p1200_p10 = por %p1360_p8, %p50_p2  ;;  %p841_p12 = scmp.lt.s32.totalorder %s1062_s23, 2 }
  0x31   : > { %p41_p11 = scmp.eq.s32.totalorder %s38_s8, 0  ;;  %s243_s7 = sand.u32 1, %s1050_s20  }
  0x32   : > { %s761_s14 = sshll.u32 %s243_s7, 5  ;;  %s789_s16 = sshll.u32 %s1058_s22, 9 }
  0x33   : > { %s1209_s15 = scalar_select %p41_p11, %s1050_s20, %s43_s11  }
  0x34   : > { %s1215_s25 = scalar_lea.hbm %s1343_s0, %s789_s16  ;;  %s247_s27 = scalar_lea.vmem [#allocation2], %s761_s14 }
  0x35   : > { %s257_s6 = sshll.u32 %s247_s27, 4  ;;  %p1221_p13 = pnand %p841_p12, %p1194_p6  ;;  %s1217_s6 = int_to_ptr.vmem [resolvable:$true] %s257_s6 }
  0x36   : > { %s1225_s11 = scalar_lea.sflag [#allocation3], %s243_s7  ;;  %s946_s8 = scalar_lea.hbm %s1215_s25, 512 }
  0x37   : > { %p947_p0 = scmp.ne.s32.totalorder %s1215_s25, %s946_s8  ;;  %p948_p3 = pneg %p1221_p13 }
  0x38   : > { %s951_s12 = scalar_lea.hbm %s1343_s0, 1024  ;;  %p952_p9 = scmp.lt.u32.totalorder %s1215_s25, %s1343_s0 }
  0x39   : > { %p949_p5 = pnand %p948_p3, %p947_p0  ;;  %p953_p1 = scmp.lt.u32.totalorder %s951_s12, %s946_s8 }
  0x3a   : > { %p955_p4 = scmp.lt.u32.totalorder %s946_s8, %s1215_s25 }
  0x3b   : > { %p950_p7 = pneg %p949_p5  ;;  %p954_p2 = por %p953_p1, %p952_p9 }
  0x3d   : > { %p956_p6 = por %p955_p4, %p954_p2 }
  0x3f   : > { %p957_p8 = pnand %p956_p6, %p950_p7 }
  0x41   : > { %960 = shalt.err (!%p957_p8)
}
  0x42   : > { %s961_s7 = scalar_lea.vmem %s1217_s6, 512  ;;  %s1067_s27 = smov [#allocation2]  }
  0x43   : > { %p962_p12 = scmp.ne.s32.totalorder %s1217_s6, %s961_s7  ;;  %s966_s14 = sshll.u32 %s1067_s27, 4  ;;  %s967_s14 = int_to_ptr.vmem [resolvable:$false] %s966_s14 }
  0x44   : > { %s968_s16 = scalar_lea.vmem %s967_s14, 1024  ;;  %p969_p5 = scmp.lt.s32.totalorder %s1217_s6, %s967_s14 }
  0x45   : > { %p964_p11 = pnand %p962_p12, %p948_p3  ;;  %p970_p9 = scmp.lt.s32.totalorder %s968_s16, %s961_s7 }
  0x47   : > { %p965_p0 = pneg %p964_p11  ;;  %p971_p1 = por %p970_p9, %p969_p5 }
  0x49   : > { %p972_p2 = pnand %p971_p1, %p965_p0 }
  0x4b   : > { %975 = shalt.err (!%p972_p2)
}
  0x4c   : > { %s1068_s8 = smov 256   ;;  %s1069_s12 = smov 16  }
  0x4d   : > { %835 = dma.hbm_to_vmem [thread:$0]  (!%p1221_p13), %s1215_s25, 512, %s1217_s6, %s1225_s11, %s1068_s8, %s1068_s8, %s1069_s12  }
  0x4e   : > { %p1363_p3 = scmp.ne.s32.totalorder %s1357_s30, 0 }
  0x4f   : > { %s1256_s17 = sand.u32 (!%p1363_p3), 1, %s1046_s19   ;;  %p1364_p7 = scmp.ne.s32.totalorder (!%p1363_p3), %s1355_s28, 0 }
  0x50   : > { %269 = sbr.rel (%p1363_p3) target bundleno = 684 (0x2ac), region = 40  ;;  %s765_s24 = sshll.u32 (!%p1363_p3), %s1256_s17, 5 }
  0x51   : > { %s272_s7 = scalar_lea.sflag (!%p1363_p3), [#allocation3], %s1256_s17  ;;  %s1260_s27 = scalar_lea.vmem (!%p1363_p3), [#allocation2], %s765_s24 }
  0x57   : > { %1029 = dma.done.wait (%p1364_p7), %s272_s7, 512  }
  0x58   : > { %1031 = vsyncadd (%p1364_p7), %s272_s7, 4294966784  ;;  %p1365_p13 = scmp.ne.s32.totalorder %s1353_s26, 0 }
  0x5a   : > { %1033 = dma.done.wait (%p1365_p13), [#allocation6], 2048  }
  0x5b   : > { %1035 = vsyncadd (%p1365_p13), [#allocation6], 4294965248  ;;  %v1070_v0 = vmov 0   ;;  %v363_v1 = vld [vmem:[%s1345_s2] sm:$0xff]  ;;  %v364_v3 = vld [vmem:[%s1345_s2 + $0x8] sm:$0xff]  ;;  %v1071_v43 = vmov 0.0  }
  0x5c   : > { %901 = vset.pattern.permute.xlu1 %v1070_v0  ;;  %900 = vset.pattern.permute.xlu0 %v1070_v0  ;;  %v347_v2 = vld [vmem:[%s1344_s1] sm:$0xff]  ;;  %v348_v4 = vld [vmem:[%s1344_s1 + $0x8] sm:$0xff]  ;;  %v906_v9 = vld [vmem:[#allocation5 + $0x50] sm:$0xff]   ;;  %vm1072_vm0 = vmmov 0   ;;  %vm557_vm1 = vcmask 130048   ;;  %s767_s12 = sshll.u32 %s1256_s17, 3 }
  0x5d   : > { %367 = vperm.xlu1 %901, %v363_v1   ;;  %351 = vperm.xlu0 %900, %v347_v2   ;;  %v902_v5 = vld [vmem:[#allocation5 + $0x40] sm:$0xff]   ;;  %v904_v7 = vld [vmem:[#allocation5 + $0x48] sm:$0xff]   ;;  %v907_v10 = vld [vmem:[#allocation5 + $0x10] sm:$0xff]   ;;  %s786_s24 = sshll.u32 %s1054_s21, 7  ;;  %s319_s7 = scalar_lea.vmem [#allocation7], %s767_s12 }
  0x5e   : > { %v903_v6 = vld [vmem:[#allocation5] sm:$0xff]   ;;  %790 = vmatprep.subr.bf16.mxu0 %v902_v5  ;;  %v905_v8 = vld [vmem:[#allocation5 + $0x8] sm:$0xff]   ;;  %v908_v11 = vld [vmem:[#allocation5 + $0x58] sm:$0xff]   ;;  %814 = vmatprep.subr.bf16.mxu1 %v1071_v43  ;;  %s1294_s6 = scalar_lea.hbm %s1348_s5, %s786_s24  ;;  %s604_s10 = scalar_lea.sflag [#allocation4], %s1256_s17 }
  0x5f   : > { %791 = vmatpush3.bf16.msra.mxu0 %v903_v6  ;;  %v909_v12 = vld [vmem:[#allocation5 + $0x18] sm:$0xff]   ;;  %v910_v13 = vld [vmem:[#allocation5 + $0x60] sm:$0xff]   ;;  %v912_v15 = vld [vmem:[#allocation5 + $0x68] sm:$0xff]   ;;  %816 = vmatprep.mubr.msk.bf16.mxu1 %vm1072_vm0, %v1071_v43  ;;  %s1073_s21 = smov [#allocation7]  }
  0x60   : > { %792 = vmatprep.subr.bf16.mxu0 %v904_v7  ;;  %v911_v14 = vld [vmem:[#allocation5 + $0x20] sm:$0xff]   ;;  %v913_v16 = vld [vmem:[#allocation5 + $0x28] sm:$0xff]   ;;  %v914_v17 = vld [vmem:[#allocation5 + $0x70] sm:$0xff]   ;;  %s980_s28 = sshll.u32 %s1073_s21, 4  ;;  %s981_s28 = int_to_ptr.vmem [resolvable:$false] %s980_s28 }
  0x61   : > { %372 = vperm.xlu1 %901, %v364_v3   ;;  %356 = vperm.xlu0 %900, %v348_v4   ;;  %v915_v18 = vld [vmem:[#allocation5 + $0x30] sm:$0xff]   ;;  %v916_v19 = vld [vmem:[#allocation5 + $0x78] sm:$0xff]   ;;  %v343_v21 = vld [vmem:[%s1260_s27] sm:$0xff]  ;;  %s982_s14 = scalar_lea.vmem %s981_s28, 256 }
  0x62   : > { %v917_v20 = vld [vmem:[#allocation5 + $0x38] sm:$0xff]   ;;  %v344_v22 = vld [vmem:[%s1260_s27 + $0x8] sm:$0xff]  ;;  %v345_v27 = vld [vmem:[%s1260_s27 + $0x10] sm:$0xff] }
  0x63   : > { %793 = vmatpush3.bf16.msra.mxu0 %v905_v8  ;;  %v346_v28 = vld [vmem:[%s1260_s27 + $0x18] sm:$0xff]  ;;  %v415_v51 = vld [vmem:[%s1347_s4] sm:$0xf]  ;;  %s617_s27 = sshll.u32 %s319_s7, 4  ;;  %s1296_s27 = int_to_ptr.vmem [resolvable:$true] %s617_s27 }
  0x64   : > { %794 = vmatprep.subr.bf16.mxu0 %v906_v9  ;;  %s976_s11 = scalar_lea.vmem %s1296_s27, 128  ;;  %p983_p12 = scmp.lt.s32.totalorder %s1296_s27, %s981_s28 }
  0x65   : > { %p977_p4 = scmp.ne.s32.totalorder %s1296_s27, %s976_s11  ;;  %p984_p11 = scmp.lt.s32.totalorder %s982_s14, %s976_s11 }
  0x67   : > { %795 = vmatpush3.bf16.msra.mxu0 %v907_v10  ;;  %p978_p6 = pnand %p977_p4, %p1200_p10  ;;  %p985_p0 = por %p984_p11, %p983_p12 }
  0x68   : > { %796 = vmatprep.subr.bf16.mxu0 %v908_v11 }
  0x69   : > { %p979_p8 = pneg %p978_p6 }
  0x6b   : > { %797 = vmatpush3.bf16.msra.mxu0 %v909_v12  ;;  %p986_p5 = pnand %p985_p0, %p979_p8 }
  0x6c   : > { %798 = vmatprep.subr.bf16.mxu0 %v910_v13 }
  0x6f   : > { %799 = vmatpush3.bf16.msra.mxu0 %v911_v14 }
  0x70   : > { %800 = vmatprep.subr.bf16.mxu0 %v912_v15 }
  0x73   : > { %801 = vmatpush3.bf16.msra.mxu0 %v913_v16 }
  0x74   : > { %802 = vmatprep.subr.bf16.mxu0 %v914_v17 }
  0x77   : > { %803 = vmatpush3.bf16.msra.mxu0 %v915_v18 }
  0x78   : > { %804 = vmatprep.subr.bf16.mxu0 %v916_v19 }
  0x7b   : > { %805 = vmatpush3.bf16.msra.mxu0 %v917_v20 }
  0xdc   : > { %v368_v23 = vpop.permute.xlu1 %367  ;;  %v352_v24 = vpop.permute.xlu0 %351 }
  0xdd   : > { %v359_v25 = vmul.f32 %v352_v24, %v343_v21  ;;  %v360_v26 = vmul.f32 %v352_v24, %v344_v22 }
  0xdf   : > { %v375_v30 = vadd.f32 %v368_v23, %v359_v25  ;;  %v376_v33 = vadd.f32 %v368_v23, %v360_v26 }
  0xe0   : > { %v357_v29 = vpop.permute.xlu0 %356  ;;  %v373_v34 = vpop.permute.xlu1 %372 }
  0xe1   : > { %v361_v31 = vmul.f32 %v357_v29, %v345_v27  ;;  %v362_v32 = vmul.f32 %v357_v29, %v346_v28  ;;  %v379_v37 = vmax.f32 %v375_v30, 0.0  ;;  %v380_v39 = vmax.f32 %v376_v33, 0.0 }
  0xe3   : > { %v377_v35 = vadd.f32 %v373_v34, %v361_v31  ;;  %v378_v36 = vadd.f32 %v373_v34, %v362_v32 }
  0xe5   : > { %v381_v38 = vmax.f32 %v377_v35, 0.0  ;;  %v382_v40 = vmax.f32 %v378_v36, 0.0 }
  0xe7   : > { %v417_v41 = vpack.c.bf16 %v382_v40, %v380_v39  ;;  %v416_v42 = vpack.c.bf16 %v381_v38, %v379_v37 }
  0xe9   : > { %546 = vmatprep.mubr.bf16.mxu0 %v417_v41 }
  0xea   : > { %547 = vmatmul.mubr.bf16.vlgmr.msra.gmra.mrb[0].mxu0 %v416_v42 }
 0x1bd   : > { %v806_v44 = vpop.f32.mrb[0].mxu0 }
 0x1be   : > { %v807_v45 = vpop.f32.mrb[1].mxu0 }
 0x1bf   : > { %v808_v46 = vadd.f32 %v807_v45, %v806_v44  ;;  %v809_v47 = vpop.f32.mrb[2].mxu0 }
 0x1c0   : > { %v810_v48 = vpop.f32.mrb[3].mxu0 }
 0x1c1   : > { %v811_v49 = vadd.f32 %v810_v48, %v809_v47 }
 0x1c3   : > { %v556_v50 = vpack.c.bf16 %v811_v49, %v808_v46 }
 0x1c5   : > { %815 = vmatpush3.bf16.msra.mxu1 %v556_v50 }
 0x1c8   : > { %817 = vmatmul.mubr.msk.bf16.vlgmr.msra.gmra.mrb[0].mxu1 %vm557_vm1, %v415_v51 }
 0x29b   : > { %v595_v52 = vpop.f32.mrb[0].mxu1 }
 0x29c   : > { %v818_v53 = vpop.f32.mrb[1].mxu1  ;;  %602 = vst [vmem:[%s319_s7] sm:$0xff] %v595_v52 }
 0x29d   : > { %v598_v54 = vpop.f32.mrb[2].mxu1 }
 0x29e   : > { %v819_v55 = vpop.f32.mrb[3].mxu1 }
 0x29f   : > { %989 = shalt.err (!%p986_p5)
}
 0x2a0   : > { %s990_s17 = scalar_lea.hbm %s1294_s6, 128  ;;  %s994_s8 = scalar_lea.hbm %s1348_s5, 256 }
 0x2a1   : > { %p991_p9 = scmp.ne.s32.totalorder %s1294_s6, %s990_s17  ;;  %p995_p3 = scmp.lt.u32.totalorder %s1294_s6, %s1348_s5 }
 0x2a2   : > { %p996_p7 = scmp.lt.u32.totalorder %s994_s8, %s990_s17  ;;  %p998_p4 = scmp.lt.u32.totalorder %s990_s17, %s1294_s6 }
 0x2a3   : > { %p992_p1 = pnand %p991_p9, %p1200_p10 }
 0x2a4   : > { %p997_p13 = por %p996_p7, %p995_p3 }
 0x2a5   : > { %p993_p2 = pneg %p992_p1 }
 0x2a6   : > { %p999_p6 = por %p998_p4, %p997_p13 }
 0x2a8   : > { %p1000_p8 = pnand %p999_p6, %p993_p2 }
 0x2aa   : > { %1003 = shalt.err (!%p1000_p8)
}
 0x2ab   : > { %826 = dma.vmem_to_hbm [thread:$0]  (%p1200_p10), %s1296_s27, 128, %s1294_s6, %s604_s10  }
 0x2ac PF: > { %s629_s7 = sand.u32 1, %s1042_s18   ;;  %p1366_p12 = scmp.ne.s32.totalorder %s1356_s29, 0 }
 0x2ad   : > { %p1367_p11 = scmp.ge.s32.totalorder %s1062_s23, 2  ;;  %s630_s30 = scalar_lea.sflag [#allocation4], %s629_s7 }
 0x2af   : > { %p837_p0 = pnand %p1367_p11, %p1366_p12 }
 0x2b1   : > { %1037 = dma.done.wait (!%p837_p0), %s630_s30, 128  }
 0x2b2   : > { %1039 = vsyncadd (!%p837_p0), %s630_s30, 4294967168  ;;  %s22_s23 = sadd.s32 1, %s1062_s23   ;;  %s1368_s18 = smov %s1046_s19 }
 0x2b3   : > { %p19_p5 = scmp.ge.s32.totalorder %s22_s23, 4   ;;  %s1369_s19 = smov %s1050_s20 }
 0x2b4   : > { %s1370_s20 = smov %s1209_s15  ;;  %s1371_s21 = smov %s1058_s22 }
 0x2b5   : > { %s1372_s22 = smov %s1374_s9  ;;  %21 = sbr.rel (!%p19_p5) target bundleno = 7 (0x7), region = 102 }
 0x2bc   :  { %635 = vsyncpa [#allocation3], 1 }
 0x2bd   :  { %637 = vsyncpa [#allocation3 + $0x1], 1 }
 0x2be   :  { %638 = vsyncpa [#allocation6], 1 }
 0x2bf   :  { %639 = vsyncpa [#allocation4], 1 }
 0x2c0   :  { %641 = vsyncpa [#allocation4 + $0x1], 1 }

</bundles_post_ra>
